<compile_context>
chip_gen: v5e
topology: v5e:2x2
jax: 0.10.0
libtpu: 0.0.40
codegen_flags: <defaults>
</compile_context>

<pallas_src>
import functools

import numpy as np
import jax
import jax.numpy as jnp
from jax.experimental import pallas as pl
from jax.experimental.pallas import tpu as pltpu


def encoder_stack_kernel(idx_ref, left_ref, right_ref, wv_ref, wfc_ref,
                         ln_g_ref, ln_b_ref, o_ref, x_ref,
                         *, n_layers, n_pairs, hidden, eps):
    """Whole encoder stack (embedding gather + L layers) in one invocation."""
    bp, hp = o_ref.shape
    inv_h = 1.0 / float(hidden)

    # ---- fused TokenEmbeddingExtractor: x[r] = left_tbl[i0] + right_tbl[i1] ----
    x_ref[...] = jnp.zeros((bp, hp), jnp.float32)      # padded rows stay zero
    for r in range(n_pairs):                           # tiny static unrolled loop
        i0 = idx_ref[r, 0]                             # scalar reads from SMEM
        i1 = idx_ref[r, 1]
        x_ref[pl.ds(r, 1), :] = left_ref[i0] + right_ref[i1]   # (1, Hp)
    x = x_ref[...]

    def layer_norm(y, gamma, beta):
        # Padded lanes of y are exactly 0, so plain sums equal sums over the
        # real `hidden` lanes; gamma/beta are zero-padded, so padded output
        # lanes stay exactly 0.  One-pass var = E[y^2] - mu^2 (slightly less
        # stable than two-pass; fine at these O(1) magnitudes).
        mu = jnp.sum(y, axis=-1, keepdims=True) * inv_h
        var = jnp.sum(y * y, axis=-1, keepdims=True) * inv_h - mu * mu
        return (y - mu) * jax.lax.rsqrt(var + eps) * gamma + beta

    # Small static layer count -> fully unrolled (LLO scheduler visibility).
    for l in range(n_layers):
        gamma = ln_g_ref[l]                            # (1, Hp), shared by both norms
        beta = ln_b_ref[l]
        # Degenerate S==1 attention: per-head output == V projection exactly,
        # so one fused (Hp x Hp) matmul replaces the whole Q/K/A/softmax path.
        # bf16 operands -> single-pass MXU; accumulate in f32.
        v = jnp.dot(x.astype(jnp.bfloat16), wv_ref[l],
                    preferred_element_type=jnp.float32)
        out1 = layer_norm(v + x, gamma, beta)          # residual 1 (f32)
        out2 = jnp.dot(out1.astype(jnp.bfloat16), wfc_ref[l],
                       preferred_element_type=jnp.float32)
        x = layer_norm(out2 + out1, gamma, beta)       # residual 2 (f32)

    o_ref[...] = x


def _round_up(n, m):
    return ((n + m - 1) // m) * m


def prepare_params(params, embedding, *, n_heads, d_h):
    """One-time host-side preparation.  Call once; reuse the result per call."""
    emb = jnp.asarray(embedding, jnp.float32)
    V, E = emb.shape
    H = 2 * E
    L = params["wfc"].shape[0]
    assert n_heads * d_h == H, "residual add requires n_heads * d_h == hidden_dim"
    assert params["wv"].shape == (L, n_heads, H, d_h)

    Hp = _round_up(max(H, 128), 128)

    # Fuse heads: wv (L, nH, H, d_h) -> (L, H, nH*d_h), head-major ordering to
    # match torch's .view(B, -1, nH, d_h).transpose(1, 2)...reshape path.
    wv_flat = jnp.transpose(params["wv"], (0, 2, 1, 3)).reshape(L, H, H)

    def pad_w(w):        # (L, H, H) -> (L, Hp, Hp) bf16, zero-padded
        return jnp.pad(w, ((0, 0), (0, Hp - H), (0, Hp - H))).astype(jnp.bfloat16)

    def pad_row(v):      # (L, 1, H) -> (L, 1, Hp) f32, zero-padded
        return jnp.pad(v, ((0, 0), (0, 0), (0, Hp - H))).astype(jnp.float32)

    # Half embedding tables: left places emb in lanes [0:E], right in [E:2E].
    # Shaped (V, 1, Hp) so the kernel gathers rows with a dynamic leading index.
    left = jnp.pad(emb, ((0, 0), (0, Hp - E)))[:, None, :]
    right = jnp.pad(emb, ((0, 0), (E, Hp - 2 * E)))[:, None, :]

    prep = {
        "left": left, "right": right,
        "wv": pad_w(wv_flat), "wfc": pad_w(params["wfc"]),
        "ln_g": pad_row(params["ln_g"]), "ln_b": pad_row(params["ln_b"]),
        "H": H, "Hp": Hp, "L": L,
    }
    jax.block_until_ready([prep["left"], prep["right"], prep["wv"], prep["wfc"],
                           prep["ln_g"], prep["ln_b"]])
    return prep


def transformer_encoder(enc_inputs, prep, *, eps=1e-5):
    """enc_inputs: (B, 2) int token-pair ids; prep: output of prepare_params."""
    idx = jnp.asarray(enc_inputs, jnp.int32)
    B = idx.shape[0]
    H, Hp, L = prep["H"], prep["Hp"], prep["L"]
    Bp = _round_up(max(B, 8), 8)

    kernel = functools.partial(encoder_stack_kernel,
                               n_layers=L, n_pairs=B, hidden=H, eps=eps)

    vmem = pl.BlockSpec(memory_space=pltpu.MemorySpace.VMEM)
    smem = pl.BlockSpec(memory_space=pltpu.MemorySpace.SMEM)

    out = pl.pallas_call(
        kernel,
        out_shape=jax.ShapeDtypeStruct((Bp, Hp), jnp.float32),
        in_specs=[smem,          # enc_inputs (pair ids)
                  vmem, vmem,    # left / right embedding half-tables
                  vmem, vmem,    # wv, wfc (bf16)
                  vmem, vmem],   # ln gamma / beta (f32)
        out_specs=vmem,
        scratch_shapes=[pltpu.VMEM((Bp, Hp), jnp.float32)],   # activation tile
    )(idx, prep["left"], prep["right"], prep["wv"], prep["wfc"],
      prep["ln_g"], prep["ln_b"])

    # Strip padding; final .view(B, -1) of the module is already (B, H).
    return out[:B, :H]


def reference_forward(enc_inputs, embedding, params, *, n_heads, d_h):
    """Plain-JAX transcription of the full PyTorch forward (S == 1),
    including the complete Q/K/A/softmax path, all in f32."""
    x = jnp.concatenate(
        [embedding[enc_inputs[:, 0]], embedding[enc_inputs[:, 1]]], axis=-1
    ).astype(jnp.float32)
    B, H = x.shape
    L = params["wfc"].shape[0]
    scale = 1.0 / np.sqrt(d_h)

    def layernorm(y, g, b, eps=1e-5):
        mu = y.mean(-1, keepdims=True)
        var = ((y - mu) ** 2).mean(-1, keepdims=True)
        return (y - mu) / jnp.sqrt(var + eps) * g + b

    out = x
    for l in range(L):
        wq1, wq2 = params["wq1"][l], params["wq2"][l]
        wk1, wk2 = params["wk1"][l], params["wk2"][l]
        wv, wfc = params["wv"][l], params["wfc"][l]
        A = params["A"][l]
        g, b = params["ln_g"][l, 0], params["ln_b"][l, 0]
        xl = out
        q = jnp.einsum("bi,ij,hjk->bhk", xl, wq1, wq2)          # (B, nH, d_h)
        k = jnp.einsum("bi,ij,hjk->bhk", xl, wk1, wk2)
        v = jnp.einsum("bi,hik->bhk", xl, wv)
        scores_vv = jnp.einsum("ji,bhj->bhi", A, k)[..., None] * scale  # (B,nH,d_h,1)
        attn_vv = jax.nn.softmax(scores_vv, axis=-1)
        VV = attn_vv * v[:, :, None, :]                          # (B,nH,d_h,d_h)
        scores2 = jnp.einsum("bhj,ij->bhi", q, A) * scale        # (B,nH,d_h)
        attn2 = jax.nn.softmax(scores2, axis=-1)
        vvv = jnp.einsum("bhi,bhij->bhj", attn2, VV).reshape(B, n_heads * d_h)
        out1 = layernorm(vvv + xl, g, b)
        out2 = out1 @ wfc
        out = layernorm(out2 + out1, g, b)
    return out


if __name__ == "__main__":
    key = jax.random.PRNGKey(0)
    V, E = 10, 16                 # vocab, emb_dim
    H = 2 * E                     # hidden_dim (pair concat)
    n_heads, d_h = 4, 8           # n_heads * d_h == hidden_dim (required by residual)
    dh2 = d_h // 2
    L = 2                         # enc_layers
    B = 4                         # number of (src, dst) pairs

    ks = jax.random.split(key, 10)
    embedding = jax.random.normal(ks[0], (V, E), jnp.float32)
    enc_inputs = jax.random.randint(ks[1], (B, 2), 1, V)        # non-pad token ids

    params = {
        # wq1/wq2/wk1/wk2/A exist only so the reference can exercise the full
        # PyTorch attention math; the kernel does not need them (S == 1 makes
        # that path exactly the identity on V, verified by the assert below).
        "wq1": 0.2 * jax.random.normal(ks[2], (L, H, dh2), jnp.float32),
        "wq2": 0.2 * jax.random.normal(ks[3], (L, n_heads, dh2, d_h), jnp.float32),
        "wk1": 0.2 * jax.random.normal(ks[4], (L, H, dh2), jnp.float32),
        "wk2": 0.2 * jax.random.normal(ks[5], (L, n_heads, dh2, d_h), jnp.float32),
        "wv":  0.2 * jax.random.normal(ks[6], (L, n_heads, H, d_h), jnp.float32),
        "wfc": 0.2 * jax.random.normal(ks[7], (L, H, H), jnp.float32),
        "A":   jax.random.normal(ks[8], (L, d_h, d_h), jnp.float32),
        "ln_g": jnp.ones((L, 1, H), jnp.float32),
        "ln_b": jnp.zeros((L, 1, H), jnp.float32),
    }

    # One-time weight/embedding preparation (cached outside the per-call path).
    prep = prepare_params(params, embedding, n_heads=n_heads, d_h=d_h)

    out = transformer_encoder(enc_inputs, prep)
    out = jax.block_until_ready(out)

    ref = reference_forward(enc_inputs, embedding, params, n_heads=n_heads, d_h=d_h)
    # Tolerance accounts for bf16 MXU operands (f32 accumulation) in the kernel.
    np.testing.assert_allclose(np.asarray(out), np.asarray(ref), rtol=2e-2, atol=2e-2)
    assert out.shape == (B, H)
    print("KERNEL_OK")
</pallas_src>

<mosaic_0001>
module attributes {stable_mosaic.version = 11 : i64} {
  func.func @encoder_stack_kernel(%arg0: memref<4x2xi32, #tpu.memory_space<smem>>, %arg1: memref<10x1x128xf32, #tpu.memory_space<vmem>>, %arg2: memref<10x1x128xf32, #tpu.memory_space<vmem>>, %arg3: memref<2x128x128xbf16, #tpu.memory_space<vmem>>, %arg4: memref<2x128x128xbf16, #tpu.memory_space<vmem>>, %arg5: memref<2x1x128xf32, #tpu.memory_space<vmem>>, %arg6: memref<2x1x128xf32, #tpu.memory_space<vmem>>, %arg7: memref<8x128xf32, #tpu.memory_space<vmem>>, %arg8: memref<8x128xf32, #tpu.memory_space<vmem>>) attributes {dimension_semantics = [], scalar_prefetch = 0 : i64, scratch_operands = 1 : i64, tpu.core_type = #tpu.core_type<tc>} {
    %cst = arith.constant 0.000000e+00 : f32
    %0 = vector.broadcast %cst : f32 to vector<8x128xf32>
    %c0 = arith.constant 0 : index
    %c0_0 = arith.constant 0 : index
    %1 = vector.load %arg8[%c0, %c0_0] : memref<8x128xf32, #tpu.memory_space<vmem>>, vector<8x128xf32>
    tpu.vector_store %arg8[%c0, %c0_0], %0 {strides = array<i32>} : memref<8x128xf32, #tpu.memory_space<vmem>>, vector<8x128xf32>,
    %c0_1 = arith.constant 0 : index
    %c0_2 = arith.constant 0 : index
    %2 = memref.load %arg0[%c0_1, %c0_2] : memref<4x2xi32, #tpu.memory_space<smem>>
    %c0_3 = arith.constant 0 : index
    %c1 = arith.constant 1 : index
    %3 = memref.load %arg0[%c0_3, %c1] : memref<4x2xi32, #tpu.memory_space<smem>>
    %4 = arith.index_cast %2 : i32 to index
    %c0_4 = arith.constant 0 : index
    %c0_5 = arith.constant 0 : index
    %5 = vector.load %arg1[%4, %c0_4, %c0_5] : memref<10x1x128xf32, #tpu.memory_space<vmem>>, vector<1x1x128xf32>
    %6 = vector.shape_cast %5 : vector<1x1x128xf32> to vector<1x128xf32>
    %7 = arith.index_cast %3 : i32 to index
    %c0_6 = arith.constant 0 : index
    %c0_7 = arith.constant 0 : index
    %8 = vector.load %arg2[%7, %c0_6, %c0_7] : memref<10x1x128xf32, #tpu.memory_space<vmem>>, vector<1x1x128xf32>
    %9 = vector.shape_cast %8 : vector<1x1x128xf32> to vector<1x128xf32>
    %10 = arith.addf %6, %9 : vector<1x128xf32>
    %c0_8 = arith.constant 0 : index
    %c0_9 = arith.constant 0 : index
    %11 = vector.load %arg8[%c0_8, %c0_9] : memref<8x128xf32, #tpu.memory_space<vmem>>, vector<1x128xf32>
    tpu.vector_store %arg8[%c0_8, %c0_9], %10 {strides = array<i32>} : memref<8x128xf32, #tpu.memory_space<vmem>>, vector<1x128xf32>,
    %c1_10 = arith.constant 1 : index
    %c0_11 = arith.constant 0 : index
    %12 = memref.load %arg0[%c1_10, %c0_11] : memref<4x2xi32, #tpu.memory_space<smem>>
    %c1_12 = arith.constant 1 : index
    %c1_13 = arith.constant 1 : index
    %13 = memref.load %arg0[%c1_12, %c1_13] : memref<4x2xi32, #tpu.memory_space<smem>>
    %14 = arith.index_cast %12 : i32 to index
    %c0_14 = arith.constant 0 : index
    %c0_15 = arith.constant 0 : index
    %15 = vector.load %arg1[%14, %c0_14, %c0_15] : memref<10x1x128xf32, #tpu.memory_space<vmem>>, vector<1x1x128xf32>
    %16 = vector.shape_cast %15 : vector<1x1x128xf32> to vector<1x128xf32>
    %17 = arith.index_cast %13 : i32 to index
    %c0_16 = arith.constant 0 : index
    %c0_17 = arith.constant 0 : index
    %18 = vector.load %arg2[%17, %c0_16, %c0_17] : memref<10x1x128xf32, #tpu.memory_space<vmem>>, vector<1x1x128xf32>
    %19 = vector.shape_cast %18 : vector<1x1x128xf32> to vector<1x128xf32>
    %20 = arith.addf %16, %19 : vector<1x128xf32>
    %c1_18 = arith.constant 1 : index
    %c0_19 = arith.constant 0 : index
    %21 = vector.load %arg8[%c1_18, %c0_19] : memref<8x128xf32, #tpu.memory_space<vmem>>, vector<1x128xf32>
    tpu.vector_store %arg8[%c1_18, %c0_19], %20 {strides = array<i32>} : memref<8x128xf32, #tpu.memory_space<vmem>>, vector<1x128xf32>,
    %c2 = arith.constant 2 : index
    %c0_20 = arith.constant 0 : index
    %22 = memref.load %arg0[%c2, %c0_20] : memref<4x2xi32, #tpu.memory_space<smem>>
    %c2_21 = arith.constant 2 : index
    %c1_22 = arith.constant 1 : index
    %23 = memref.load %arg0[%c2_21, %c1_22] : memref<4x2xi32, #tpu.memory_space<smem>>
    %24 = arith.index_cast %22 : i32 to index
    %c0_23 = arith.constant 0 : index
    %c0_24 = arith.constant 0 : index
    %25 = vector.load %arg1[%24, %c0_23, %c0_24] : memref<10x1x128xf32, #tpu.memory_space<vmem>>, vector<1x1x128xf32>
    %26 = vector.shape_cast %25 : vector<1x1x128xf32> to vector<1x128xf32>
    %27 = arith.index_cast %23 : i32 to index
    %c0_25 = arith.constant 0 : index
    %c0_26 = arith.constant 0 : index
    %28 = vector.load %arg2[%27, %c0_25, %c0_26] : memref<10x1x128xf32, #tpu.memory_space<vmem>>, vector<1x1x128xf32>
    %29 = vector.shape_cast %28 : vector<1x1x128xf32> to vector<1x128xf32>
    %30 = arith.addf %26, %29 : vector<1x128xf32>
    %c2_27 = arith.constant 2 : index
    %c0_28 = arith.constant 0 : index
    %31 = vector.load %arg8[%c2_27, %c0_28] : memref<8x128xf32, #tpu.memory_space<vmem>>, vector<1x128xf32>
    tpu.vector_store %arg8[%c2_27, %c0_28], %30 {strides = array<i32>} : memref<8x128xf32, #tpu.memory_space<vmem>>, vector<1x128xf32>,
    %c3 = arith.constant 3 : index
    %c0_29 = arith.constant 0 : index
    %32 = memref.load %arg0[%c3, %c0_29] : memref<4x2xi32, #tpu.memory_space<smem>>
    %c3_30 = arith.constant 3 : index
    %c1_31 = arith.constant 1 : index
    %33 = memref.load %arg0[%c3_30, %c1_31] : memref<4x2xi32, #tpu.memory_space<smem>>
    %34 = arith.index_cast %32 : i32 to index
    %c0_32 = arith.constant 0 : index
    %c0_33 = arith.constant 0 : index
    %35 = vector.load %arg1[%34, %c0_32, %c0_33] : memref<10x1x128xf32, #tpu.memory_space<vmem>>, vector<1x1x128xf32>
    %36 = vector.shape_cast %35 : vector<1x1x128xf32> to vector<1x128xf32>
    %37 = arith.index_cast %33 : i32 to index
    %c0_34 = arith.constant 0 : index
    %c0_35 = arith.constant 0 : index
    %38 = vector.load %arg2[%37, %c0_34, %c0_35] : memref<10x1x128xf32, #tpu.memory_space<vmem>>, vector<1x1x128xf32>
    %39 = vector.shape_cast %38 : vector<1x1x128xf32> to vector<1x128xf32>
    %40 = arith.addf %36, %39 : vector<1x128xf32>
    %c3_36 = arith.constant 3 : index
    %c0_37 = arith.constant 0 : index
    %41 = vector.load %arg8[%c3_36, %c0_37] : memref<8x128xf32, #tpu.memory_space<vmem>>, vector<1x128xf32>
    tpu.vector_store %arg8[%c3_36, %c0_37], %40 {strides = array<i32>} : memref<8x128xf32, #tpu.memory_space<vmem>>, vector<1x128xf32>,
    %c0_38 = arith.constant 0 : index
    %c0_39 = arith.constant 0 : index
    %42 = vector.load %arg8[%c0_38, %c0_39] : memref<8x128xf32, #tpu.memory_space<vmem>>, vector<8x128xf32>
    %c0_40 = arith.constant 0 : index
    %c0_41 = arith.constant 0 : index
    %c0_42 = arith.constant 0 : index
    %43 = vector.load %arg5[%c0_40, %c0_41, %c0_42] : memref<2x1x128xf32, #tpu.memory_space<vmem>>, vector<1x1x128xf32>
    %44 = vector.shape_cast %43 : vector<1x1x128xf32> to vector<1x128xf32>
    %c0_43 = arith.constant 0 : index
    %c0_44 = arith.constant 0 : index
    %c0_45 = arith.constant 0 : index
    %45 = vector.load %arg6[%c0_43, %c0_44, %c0_45] : memref<2x1x128xf32, #tpu.memory_space<vmem>>, vector<1x1x128xf32>
    %46 = vector.shape_cast %45 : vector<1x1x128xf32> to vector<1x128xf32>
    %47 = arith.truncf %42 : vector<8x128xf32> to vector<8x128xbf16>
    %c0_46 = arith.constant 0 : index
    %c0_47 = arith.constant 0 : index
    %c0_48 = arith.constant 0 : index
    %48 = vector.load %arg3[%c0_46, %c0_47, %c0_48] : memref<2x128x128xbf16, #tpu.memory_space<vmem>>, vector<1x128x128xbf16>
    %49 = vector.shape_cast %48 : vector<1x128x128xbf16> to vector<128x128xbf16>
    %cst_49 = arith.constant dense<0.000000e+00> : vector<8x128xf32>
    %50 = tpu.matmul %47, %49, %cst_49 {dimension_numbers = #tpu.dot_dimension_numbers<[1], [0], [0], [1], [0, 0, 1, 1], [], []>} : vector<8x128xbf16>, vector<128x128xbf16>, vector<8x128xf32> -> vector<8x128xf32>
    %51 = arith.addf %50, %42 : vector<8x128xf32>
    %cst_50 = arith.constant dense<0.000000e+00> : vector<8xf32>
    %52 = vector.multi_reduction <add>, %51, %cst_50 [1] : vector<8x128xf32> to vector<8xf32>
    %53 = vector.shape_cast %52 : vector<8xf32> to vector<8x1xf32>
    %cst_51 = arith.constant 3.125000e-02 : f32
    %54 = vector.broadcast %cst_51 : f32 to vector<8x1xf32>
    %55 = arith.mulf %53, %54 : vector<8x1xf32>
    %56 = arith.mulf %51, %51 : vector<8x128xf32>
    %cst_52 = arith.constant dense<0.000000e+00> : vector<8xf32>
    %57 = vector.multi_reduction <add>, %56, %cst_52 [1] : vector<8x128xf32> to vector<8xf32>
    %58 = vector.shape_cast %57 : vector<8xf32> to vector<8x1xf32>
    %cst_53 = arith.constant 3.125000e-02 : f32
    %59 = vector.broadcast %cst_53 : f32 to vector<8x1xf32>
    %60 = arith.mulf %58, %59 : vector<8x1xf32>
    %61 = arith.mulf %55, %55 : vector<8x1xf32>
    %62 = arith.subf %60, %61 : vector<8x1xf32>
    %63 = vector.broadcast %55 : vector<8x1xf32> to vector<8x128xf32>
    %64 = arith.subf %51, %63 : vector<8x128xf32>
    %cst_54 = arith.constant 9.99999974E-6 : f32
    %65 = vector.broadcast %cst_54 : f32 to vector<8x1xf32>
    %66 = arith.addf %62, %65 : vector<8x1xf32>
    %67 = math.rsqrt %66 : vector<8x1xf32>
    %68 = vector.broadcast %67 : vector<8x1xf32> to vector<8x128xf32>
    %69 = arith.mulf %64, %68 : vector<8x128xf32>
    %70 = vector.broadcast %44 : vector<1x128xf32> to vector<8x128xf32>
    %71 = arith.mulf %69, %70 : vector<8x128xf32>
    %72 = vector.broadcast %46 : vector<1x128xf32> to vector<8x128xf32>
    %73 = arith.addf %71, %72 : vector<8x128xf32>
    %74 = arith.truncf %73 : vector<8x128xf32> to vector<8x128xbf16>
    %c0_55 = arith.constant 0 : index
    %c0_56 = arith.constant 0 : index
    %c0_57 = arith.constant 0 : index
    %75 = vector.load %arg4[%c0_55, %c0_56, %c0_57] : memref<2x128x128xbf16, #tpu.memory_space<vmem>>, vector<1x128x128xbf16>
    %76 = vector.shape_cast %75 : vector<1x128x128xbf16> to vector<128x128xbf16>
    %cst_58 = arith.constant dense<0.000000e+00> : vector<8x128xf32>
    %77 = tpu.matmul %74, %76, %cst_58 {dimension_numbers = #tpu.dot_dimension_numbers<[1], [0], [0], [1], [0, 0, 1, 1], [], []>} : vector<8x128xbf16>, vector<128x128xbf16>, vector<8x128xf32> -> vector<8x128xf32>
    %78 = arith.addf %77, %73 : vector<8x128xf32>
    %cst_59 = arith.constant dense<0.000000e+00> : vector<8xf32>
    %79 = vector.multi_reduction <add>, %78, %cst_59 [1] : vector<8x128xf32> to vector<8xf32>
    %80 = vector.shape_cast %79 : vector<8xf32> to vector<8x1xf32>
    %cst_60 = arith.constant 3.125000e-02 : f32
    %81 = vector.broadcast %cst_60 : f32 to vector<8x1xf32>
    %82 = arith.mulf %80, %81 : vector<8x1xf32>
    %83 = arith.mulf %78, %78 : vector<8x128xf32>
    %cst_61 = arith.constant dense<0.000000e+00> : vector<8xf32>
    %84 = vector.multi_reduction <add>, %83, %cst_61 [1] : vector<8x128xf32> to vector<8xf32>
    %85 = vector.shape_cast %84 : vector<8xf32> to vector<8x1xf32>
    %cst_62 = arith.constant 3.125000e-02 : f32
    %86 = vector.broadcast %cst_62 : f32 to vector<8x1xf32>
    %87 = arith.mulf %85, %86 : vector<8x1xf32>
    %88 = arith.mulf %82, %82 : vector<8x1xf32>
    %89 = arith.subf %87, %88 : vector<8x1xf32>
    %90 = vector.broadcast %82 : vector<8x1xf32> to vector<8x128xf32>
    %91 = arith.subf %78, %90 : vector<8x128xf32>
    %cst_63 = arith.constant 9.99999974E-6 : f32
    %92 = vector.broadcast %cst_63 : f32 to vector<8x1xf32>
    %93 = arith.addf %89, %92 : vector<8x1xf32>
    %94 = math.rsqrt %93 : vector<8x1xf32>
    %95 = vector.broadcast %94 : vector<8x1xf32> to vector<8x128xf32>
    %96 = arith.mulf %91, %95 : vector<8x128xf32>
    %97 = vector.broadcast %44 : vector<1x128xf32> to vector<8x128xf32>
    %98 = arith.mulf %96, %97 : vector<8x128xf32>
    %99 = vector.broadcast %46 : vector<1x128xf32> to vector<8x128xf32>
    %100 = arith.addf %98, %99 : vector<8x128xf32>
    %c1_64 = arith.constant 1 : index
    %c0_65 = arith.constant 0 : index
    %c0_66 = arith.constant 0 : index
    %101 = vector.load %arg5[%c1_64, %c0_65, %c0_66] : memref<2x1x128xf32, #tpu.memory_space<vmem>>, vector<1x1x128xf32>
    %102 = vector.shape_cast %101 : vector<1x1x128xf32> to vector<1x128xf32>
    %c1_67 = arith.constant 1 : index
    %c0_68 = arith.constant 0 : index
    %c0_69 = arith.constant 0 : index
    %103 = vector.load %arg6[%c1_67, %c0_68, %c0_69] : memref<2x1x128xf32, #tpu.memory_space<vmem>>, vector<1x1x128xf32>
    %104 = vector.shape_cast %103 : vector<1x1x128xf32> to vector<1x128xf32>
    %105 = arith.truncf %100 : vector<8x128xf32> to vector<8x128xbf16>
    %c1_70 = arith.constant 1 : index
    %c0_71 = arith.constant 0 : index
    %c0_72 = arith.constant 0 : index
    %106 = vector.load %arg3[%c1_70, %c0_71, %c0_72] : memref<2x128x128xbf16, #tpu.memory_space<vmem>>, vector<1x128x128xbf16>
    %107 = vector.shape_cast %106 : vector<1x128x128xbf16> to vector<128x128xbf16>
    %cst_73 = arith.constant dense<0.000000e+00> : vector<8x128xf32>
    %108 = tpu.matmul %105, %107, %cst_73 {dimension_numbers = #tpu.dot_dimension_numbers<[1], [0], [0], [1], [0, 0, 1, 1], [], []>} : vector<8x128xbf16>, vector<128x128xbf16>, vector<8x128xf32> -> vector<8x128xf32>
    %109 = arith.addf %108, %100 : vector<8x128xf32>
    %cst_74 = arith.constant dense<0.000000e+00> : vector<8xf32>
    %110 = vector.multi_reduction <add>, %109, %cst_74 [1] : vector<8x128xf32> to vector<8xf32>
    %111 = vector.shape_cast %110 : vector<8xf32> to vector<8x1xf32>
    %cst_75 = arith.constant 3.125000e-02 : f32
    %112 = vector.broadcast %cst_75 : f32 to vector<8x1xf32>
    %113 = arith.mulf %111, %112 : vector<8x1xf32>
    %114 = arith.mulf %109, %109 : vector<8x128xf32>
    %cst_76 = arith.constant dense<0.000000e+00> : vector<8xf32>
    %115 = vector.multi_reduction <add>, %114, %cst_76 [1] : vector<8x128xf32> to vector<8xf32>
    %116 = vector.shape_cast %115 : vector<8xf32> to vector<8x1xf32>
    %cst_77 = arith.constant 3.125000e-02 : f32
    %117 = vector.broadcast %cst_77 : f32 to vector<8x1xf32>
    %118 = arith.mulf %116, %117 : vector<8x1xf32>
    %119 = arith.mulf %113, %113 : vector<8x1xf32>
    %120 = arith.subf %118, %119 : vector<8x1xf32>
    %121 = vector.broadcast %113 : vector<8x1xf32> to vector<8x128xf32>
    %122 = arith.subf %109, %121 : vector<8x128xf32>
    %cst_78 = arith.constant 9.99999974E-6 : f32
    %123 = vector.broadcast %cst_78 : f32 to vector<8x1xf32>
    %124 = arith.addf %120, %123 : vector<8x1xf32>
    %125 = math.rsqrt %124 : vector<8x1xf32>
    %126 = vector.broadcast %125 : vector<8x1xf32> to vector<8x128xf32>
    %127 = arith.mulf %122, %126 : vector<8x128xf32>
    %128 = vector.broadcast %102 : vector<1x128xf32> to vector<8x128xf32>
    %129 = arith.mulf %127, %128 : vector<8x128xf32>
    %130 = vector.broadcast %104 : vector<1x128xf32> to vector<8x128xf32>
    %131 = arith.addf %129, %130 : vector<8x128xf32>
    %132 = arith.truncf %131 : vector<8x128xf32> to vector<8x128xbf16>
    %c1_79 = arith.constant 1 : index
    %c0_80 = arith.constant 0 : index
    %c0_81 = arith.constant 0 : index
    %133 = vector.load %arg4[%c1_79, %c0_80, %c0_81] : memref<2x128x128xbf16, #tpu.memory_space<vmem>>, vector<1x128x128xbf16>
    %134 = vector.shape_cast %133 : vector<1x128x128xbf16> to vector<128x128xbf16>
    %cst_82 = arith.constant dense<0.000000e+00> : vector<8x128xf32>
    %135 = tpu.matmul %132, %134, %cst_82 {dimension_numbers = #tpu.dot_dimension_numbers<[1], [0], [0], [1], [0, 0, 1, 1], [], []>} : vector<8x128xbf16>, vector<128x128xbf16>, vector<8x128xf32> -> vector<8x128xf32>
    %136 = arith.addf %135, %131 : vector<8x128xf32>
    %cst_83 = arith.constant dense<0.000000e+00> : vector<8xf32>
    %137 = vector.multi_reduction <add>, %136, %cst_83 [1] : vector<8x128xf32> to vector<8xf32>
    %138 = vector.shape_cast %137 : vector<8xf32> to vector<8x1xf32>
    %cst_84 = arith.constant 3.125000e-02 : f32
    %139 = vector.broadcast %cst_84 : f32 to vector<8x1xf32>
    %140 = arith.mulf %138, %139 : vector<8x1xf32>
    %141 = arith.mulf %136, %136 : vector<8x128xf32>
    %cst_85 = arith.constant dense<0.000000e+00> : vector<8xf32>
    %142 = vector.multi_reduction <add>, %141, %cst_85 [1] : vector<8x128xf32> to vector<8xf32>
    %143 = vector.shape_cast %142 : vector<8xf32> to vector<8x1xf32>
    %cst_86 = arith.constant 3.125000e-02 : f32
    %144 = vector.broadcast %cst_86 : f32 to vector<8x1xf32>
    %145 = arith.mulf %143, %144 : vector<8x1xf32>
    %146 = arith.mulf %140, %140 : vector<8x1xf32>
    %147 = arith.subf %145, %146 : vector<8x1xf32>
    %148 = vector.broadcast %140 : vector<8x1xf32> to vector<8x128xf32>
    %149 = arith.subf %136, %148 : vector<8x128xf32>
    %cst_87 = arith.constant 9.99999974E-6 : f32
    %150 = vector.broadcast %cst_87 : f32 to vector<8x1xf32>
    %151 = arith.addf %147, %150 : vector<8x1xf32>
    %152 = math.rsqrt %151 : vector<8x1xf32>
    %153 = vector.broadcast %152 : vector<8x1xf32> to vector<8x128xf32>
    %154 = arith.mulf %149, %153 : vector<8x128xf32>
    %155 = vector.broadcast %102 : vector<1x128xf32> to vector<8x128xf32>
    %156 = arith.mulf %154, %155 : vector<8x128xf32>
    %157 = vector.broadcast %104 : vector<1x128xf32> to vector<8x128xf32>
    %158 = arith.addf %156, %157 : vector<8x128xf32>
    %c0_88 = arith.constant 0 : index
    %c0_89 = arith.constant 0 : index
    %159 = vector.load %arg7[%c0_88, %c0_89] : memref<8x128xf32, #tpu.memory_space<vmem>>, vector<8x128xf32>
    tpu.vector_store %arg7[%c0_88, %c0_89], %158 {strides = array<i32>} : memref<8x128xf32, #tpu.memory_space<vmem>>, vector<8x128xf32>,
    return
  }
}

</mosaic_0001>

<bundles_post_ra>
// kernel: tpu_custom_call.1
= control target key start
LH: loop header
LB: loop body
LE: loop exit
PB: predicated region body
PF: predicated region fallthrough
CT: control target
= control target key end

     0   :  { %12 = vsyncpa [#allocation6], 0  ;;  %s1009_s0 = inlined_call_operand.vmem [shape: s32[4,2], index: 0, kind: input, shape index: {}]   ;;  %s1010_s1 = inlined_call_operand.hbm [shape: f32[10,1,128], index: 1, kind: input, shape index: {}]   ;;  %s1011_s2 = inlined_call_operand.hbm [shape: f32[10,1,128], index: 2, kind: input, shape index: {}]   ;;  %s1012_s3 = inlined_call_operand.hbm [shape: bf16[2,128,128], index: 3, kind: input, shape index: {}]   ;;  %s1013_s4 = inlined_call_operand.hbm [shape: bf16[2,128,128], index: 4, kind: input, shape index: {}]   ;;  %s1014_s5 = inlined_call_operand.vmem [shape: f32[2,1,128], index: 5, kind: input, shape index: {}]   ;;  %s1015_s6 = inlined_call_operand.vmem [shape: f32[2,1,128], index: 6, kind: input, shape index: {}]   ;;  %s1016_s7 = inlined_call_operand.hbm [shape: f32[8,128], index: 7, kind: output, shape index: {}]  }
   0x1   :  { %13 = vsyncpa [#allocation4], 0 }
   0x2   :  { %14 = vsyncpa [#allocation9], 0 }
   0x3   :  { %15 = vsyncpa [#allocation12], 0 }
   0x4   :  { %16 = vsyncpa [#allocation5], 0  ;;  %s43_s26 = sshll.u32 %s1011_s2, 4  ;;  %s928_s27 = smov [#allocation8]   ;;  %s44_s26 = int_to_ptr.hbm [resolvable:$true] %s43_s26 }
   0x5   :  { %s45_s28 = sshll.u32 %s928_s27, 4  ;;  %s22_s8 = sshll.u32 %s1009_s0, 4  ;;  %s46_s28 = int_to_ptr.vmem [resolvable:$true] %s45_s28  ;;  %s23_s8 = int_to_ptr.vmem [resolvable:$true] %s22_s8 }
   0x6   :  { %s929_s9 = smov 16   ;;  %s930_s10 = smov 1  }
   0x7   :  { %51 = dma.hbm_to_vmem [thread:$0]  %s44_s26, 160, %s46_s28, [#allocation9], %s929_s9, %s929_s9, %s930_s10  }
   0x8   :  { %s931_s11 = smov [#allocation3]   ;;  %s30_s14 = sshll.u32 %s1010_s1, 4  ;;  %s31_s14 = int_to_ptr.hbm [resolvable:$true] %s30_s14 }
   0x9   :  { %25 = dma.vmem_to_smem %s23_s8, 64, %s931_s11, [#allocation6]  }
   0xa   :  { %s932_s2 = smov [#allocation7]   ;;  %s56_s18 = sshll.u32 %s1012_s3, 4  ;;  %s57_s18 = int_to_ptr.hbm [resolvable:$true] %s56_s18 }
   0xb   :  { %s32_s15 = sshll.u32 %s932_s2, 4  ;;  %s933_s0 = smov [#allocation10]   ;;  %s33_s15 = int_to_ptr.vmem [resolvable:$true] %s32_s15 }
   0xc   :  { %38 = dma.hbm_to_vmem [thread:$0]  %s31_s14, 160, %s33_s15, [#allocation4], %s929_s9, %s929_s9, %s930_s10  }
   0xd   :  { %s58_s19 = sshll.u32 %s933_s0, 4  ;;  %s934_s20 = smov 64   ;;  %s59_s19 = int_to_ptr.vmem [resolvable:$true] %s58_s19 }
   0xe   :  { %s935_s21 = smov 4   ;;  %s69_s1 = sshll.u32 %s1013_s4, 4  ;;  %s70_s1 = int_to_ptr.hbm [resolvable:$true] %s69_s1 }
   0xf   :  { %64 = dma.hbm_to_vmem [thread:$0]  %s57_s18, 2048, %s59_s19, [#allocation9], %s934_s20, %s934_s20, %s935_s21  }
  0x10   :  { %s936_s24 = smov [#allocation11]  }
  0x11   :  { %s71_s25 = sshll.u32 %s936_s24, 4  ;;  %s72_s25 = int_to_ptr.vmem [resolvable:$true] %s71_s25 }
  0x12   :  { %77 = dma.hbm_to_vmem [thread:$0]  %s70_s1, 2048, %s72_s25, [#allocation12], %s934_s20, %s934_s20, %s935_s21  }
  0x13   :  { %918 = dma.done.wait [#allocation6], 64  }
  0x14   :  { %919 = vsyncadd [#allocation6], 4294967232 }
  0x15   :  { %920 = dma.done.wait [#allocation4], 160  }
  0x16   :  { %921 = vsyncadd [#allocation4], 4294967136 }
  0x17   :  { %922 = dma.done.wait [#allocation9], 2208  }
  0x18   :  { %923 = vsyncadd [#allocation9], 4294965088 }
  0x19   :  { %924 = dma.done.wait [#allocation12], 2048  }
  0x1a   :  { %925 = vsyncadd [#allocation12], 4294965248 }
  0x1b   :  { %102 = sfence }
  0x1c   :  { %v738_v0 = vld [vmem:[#allocation10 + $0x38] sm:$0xff]  ;;  %s104_s3 = sld [smem:[#allocation3]]  ;;  %v937_v1 = vmov 0.0   ;;  %v737_v2 = vld [vmem:[#allocation10 + $0x30] sm:$0xff]  ;;  %v736_v3 = vld [vmem:[#allocation10 + $0x28] sm:$0xff]  ;;  %s573_s24 = sshll.u32 %s1016_s7, 4  ;;  %s574_s24 = int_to_ptr.hbm [resolvable:$true] %s573_s24 }
  0x1d   :  { %103 = vst [vmem:[#allocation2] sm:$0xff] %v937_v1  ;;  %s594_s26 = sld [smem:[#allocation3 + $0x1]]  ;;  %204 = vmatpush.bf16.msra.mxu0 %v738_v0  ;;  %v735_v8 = vld [vmem:[#allocation10 + $0x20] sm:$0xff]  ;;  %v734_v15 = vld [vmem:[#allocation10 + $0x18] sm:$0xff]  ;;  %v733_v18 = vld [vmem:[#allocation10 + $0x10] sm:$0xff] }
  0x1e   :  { %s595_s4 = sld [smem:[#allocation3 + $0x80]]  ;;  %v732_v19 = vld [vmem:[#allocation10 + $0x8] sm:$0xff]  ;;  %v731_v20 = vld [vmem:[#allocation10] sm:$0xff]  ;;  %v746_v27 = vld [vmem:[#allocation11 + $0x38] sm:$0xff] }
  0x1f   :  { %s596_s27 = sld [smem:[#allocation3 + $0x81]]  ;;  %312 = vmatpush.bf16.msra.mxu1 %v746_v27  ;;  %v745_v28 = vld [vmem:[#allocation11 + $0x30] sm:$0xff]  ;;  %v744_v29 = vld [vmem:[#allocation11 + $0x28] sm:$0xff]  ;;  %v743_v30 = vld [vmem:[#allocation11 + $0x20] sm:$0xff] }
  0x20   :  { %s597_s28 = sld [smem:[#allocation3 + $0x100]]  ;;  %v742_v31 = vld [vmem:[#allocation11 + $0x18] sm:$0xff]  ;;  %v741_v32 = vld [vmem:[#allocation11 + $0x10] sm:$0xff]  ;;  %v740_v33 = vld [vmem:[#allocation11 + $0x8] sm:$0xff] }
  0x21   :  { %s598_s29 = sld [smem:[#allocation3 + $0x101]]  ;;  %205 = vmatpush.bf16.msra.mxu0 %v737_v2  ;;  %v739_v35 = vld [vmem:[#allocation11] sm:$0xff]  ;;  %v754_v60 = vld [vmem:[#allocation10 + $0x78] sm:$0xff]  ;;  %v753_v61 = vld [vmem:[#allocation10 + $0x70] sm:$0xff] }
  0x22   :  { %s599_s30 = sld [smem:[#allocation3 + $0x180]]  ;;  %s106_s8 = scalar_lea.vmem [#allocation7], %s104_s3  ;;  %v774_v49 = vld [vmem:[%s1014_s5] ss:$0 sm:$0xff]  ;;  %419 = vmatpush.bf16.msra.mxu2 %v754_v60  ;;  %v752_v62 = vld [vmem:[#allocation10 + $0x68] sm:$0xff]  ;;  %v750_v0 = vld [vmem:[#allocation10 + $0x58] sm:$0xff] }
  0x23   :  { %v107_v4 = vld [vmem:[%s106_s8] sm:$0x1]  ;;  %s600_s9 = sld [smem:[#allocation3 + $0x181]]  ;;  %s108_s10 = scalar_lea.vmem [#allocation8], %s594_s26  ;;  %313 = vmatpush.bf16.msra.mxu1 %v745_v28  ;;  %v749_v1 = vld [vmem:[#allocation10 + $0x50] sm:$0xff]  ;;  %v748_v2 = vld [vmem:[#allocation10 + $0x48] sm:$0xff] }
  0x24   :  { %v109_v5 = vld [vmem:[%s108_s10] sm:$0x1]  ;;  %s114_s11 = scalar_lea.vmem [#allocation7], %s595_s4  ;;  %v762_v27 = vld [vmem:[#allocation11 + $0x78] sm:$0xff]  ;;  %v761_v28 = vld [vmem:[#allocation11 + $0x70] sm:$0xff] }
  0x25   :  { %v110_v6 = vadd.f32 %v109_v5, %v107_v4  ;;  %v115_v7 = vld [vmem:[%s114_s11] sm:$0x1]  ;;  %206 = vmatpush.bf16.msra.mxu0 %v736_v3  ;;  %s116_s12 = scalar_lea.vmem [#allocation8], %s596_s27  ;;  %528 = vmatpush.bf16.msra.mxu3 %v762_v27 }
  0x26   :  { %v117_v9 = vld [vmem:[%s116_s12] sm:$0x1]  ;;  %s122_s13 = scalar_lea.vmem [#allocation7], %s597_s28  ;;  %420 = vmatpush.bf16.msra.mxu2 %v753_v61 }
  0x27   :  { %111 = vst [vmem:[#allocation2] sm:$0x1] %v110_v6  ;;  %v118_v10 = vadd.f32 %v117_v9, %v115_v7  ;;  %v123_v11 = vld [vmem:[%s122_s13] sm:$0x1]  ;;  %s124_s14 = scalar_lea.vmem [#allocation8], %s598_s29  ;;  %314 = vmatpush.bf16.msra.mxu1 %v744_v29  ;;  %v760_v29 = vld [vmem:[#allocation11 + $0x68] sm:$0xff] }
  0x28   :  { %v125_v12 = vld [vmem:[%s124_s14] sm:$0x1]  ;;  %s130_s2 = scalar_lea.vmem [#allocation7], %s599_s30 }
  0x29   :  { %119 = vst [vmem:[#allocation2 + $0x1] sm:$0x1] %v118_v10  ;;  %v126_v13 = vadd.f32 %v125_v12, %v123_v11  ;;  %v131_v14 = vld [vmem:[%s130_s2] sm:$0x1]  ;;  %207 = vmatpush.bf16.msra.mxu0 %v735_v8  ;;  %s132_s15 = scalar_lea.vmem [#allocation8], %s600_s9  ;;  %529 = vmatpush.bf16.msra.mxu3 %v761_v28 }
  0x2a   :  { %v133_v16 = vld [vmem:[%s132_s15] sm:$0x1]  ;;  %421 = vmatpush.bf16.msra.mxu2 %v752_v62 }
  0x2b   :  { %127 = vst [vmem:[#allocation2 + $0x2] sm:$0x1] %v126_v13  ;;  %v134_v17 = vadd.f32 %v133_v16, %v131_v14  ;;  %315 = vmatpush.bf16.msra.mxu1 %v743_v30  ;;  %v775_v52 = vld [vmem:[%s1015_s6] ss:$0 sm:$0xff] }
  0x2c   :  { %v751_v63 = vld [vmem:[#allocation10 + $0x60] sm:$0xff] }
  0x2d   :  { %135 = vst [vmem:[#allocation2 + $0x3] sm:$0x1] %v134_v17  ;;  %208 = vmatpush.bf16.msra.mxu0 %v734_v15  ;;  %v747_v4 = vld [vmem:[#allocation10 + $0x40] sm:$0xff]  ;;  %530 = vmatpush.bf16.msra.mxu3 %v760_v29 }
  0x2e   :  { %422 = vmatpush.bf16.msra.mxu2 %v751_v63  ;;  %v759_v30 = vld [vmem:[#allocation11 + $0x60] sm:$0xff] }
  0x2f   :  { %316 = vmatpush.bf16.msra.mxu1 %v742_v31  ;;  %v758_v31 = vld [vmem:[#allocation11 + $0x58] sm:$0xff] }
  0x31   :  { %209 = vmatpush.bf16.msra.mxu0 %v733_v18  ;;  %531 = vmatpush.bf16.msra.mxu3 %v759_v30 }
  0x32   :  { %423 = vmatpush.bf16.msra.mxu2 %v750_v0 }
  0x33   :  { %317 = vmatpush.bf16.msra.mxu1 %v741_v32  ;;  %v757_v32 = vld [vmem:[#allocation11 + $0x50] sm:$0xff] }
  0x34   :  { %v136_v21 = vld [vmem:[#allocation2] sm:$0xff] }
  0x35   :  { %210 = vmatpush.bf16.msra.mxu0 %v732_v19  ;;  %v139_v22 = vpack.c.bf16 %v136_v21, %v136_v21  ;;  %532 = vmatpush.bf16.msra.mxu3 %v758_v31 }
  0x36   :  { %424 = vmatpush.bf16.msra.mxu2 %v749_v1 }
  0x37   :  { %318 = vmatpush.bf16.msra.mxu1 %v740_v33  ;;  %v756_v33 = vld [vmem:[#allocation11 + $0x48] sm:$0xff] }
  0x39   :  { %211 = vmatpush.bf16.msra.mxu0 %v731_v20  ;;  %533 = vmatpush.bf16.msra.mxu3 %v757_v32 }
  0x3a   :  { %425 = vmatpush.bf16.msra.mxu2 %v748_v2 }
  0x3b   :  { %319 = vmatpush.bf16.msra.mxu1 %v739_v35  ;;  %v755_v35 = vld [vmem:[#allocation11 + $0x40] sm:$0xff] }
  0x3c   :  { %212 = vmatmul.bf16.vlgmr.msra.gmra.mxu0 %v139_v22 }
  0x3d   :  { %534 = vmatpush.bf16.msra.mxu3 %v756_v33 }
  0x3e   :  { %426 = vmatpush.bf16.msra.mxu2 %v747_v4 }
  0x41   :  { %535 = vmatpush.bf16.msra.mxu3 %v755_v35 }
  0xb9   :  { %v213_v23 = vpop.f32.mrf.mxu0 }
  0xba   :  { %v214_v24 = vadd.f32 %v213_v23, %v136_v21 }
  0xbc   :  { %217 = vadd.xlane.f32.xlu0 %v214_v24  ;;  %v220_v26 = vmul.f32 %v214_v24, %v214_v24 }
  0xc1   :  { %v215_v25 = vpop.f32.mrf.mxu0 }
  0xc4   :  { %221 = vadd.xlane.f32.xlu0 %v220_v26 }
 0x12f   :  { %v218_v34 = vpop.xlane.xlu0 %217 }
 0x130   :  { %v219_v36 = vmul.f32 0.03125, %v218_v34 }
 0x132   :  { %v224_v38 = vmul.f32 %v219_v36, %v219_v36  ;;  %v226_v48 = vsub.f32 %v214_v24, %v219_v36 }
 0x137   :  { %v222_v37 = vpop.xlane.xlu0 %221 }
 0x138   :  { %v223_v39 = vmul.f32 0.03125, %v222_v37 }
 0x13a   :  { %v225_v40 = vsub.f32 %v223_v39, %v224_v38 }
 0x13c   :  { %v227_v41 = vadd.f32 1e-05, %v225_v40 }
 0x13e   :  { %778 = vrsqrt.f32 %v227_v41  ;;  %vm234_vm1 = vweird.f32 %v227_v41 }
 0x144   :  { %v779_v42 = vpop.eup %778 }
 0x145   :  { %v229_v43 = vmul.f32 %v779_v42, %v227_v41  ;;  %vm235_vm0 = vweird.f32 %v779_v42 }
 0x146   :  { %vm236_vm2 = vmor %vm234_vm1, %vm235_vm0 }
 0x147   :  { %v230_v44 = vmul.f32 %v779_v42, %v229_v43 }
 0x149   :  { %v231_v45 = vmul.f32 0.5, %v230_v44 }
 0x14b   :  { %v232_v46 = vsub.f32 1.5, %v231_v45 }
 0x14d   :  { %v233_v47 = vmul.f32 %v779_v42, %v232_v46 }
 0x14f   :  { %v237_v50 = vsel %vm236_vm2, %v779_v42, %v233_v47 }
 0x150   :  { %v238_v51 = vmul.f32 %v237_v50, %v226_v48 }
 0x152   :  { %v242_v53 = vmul.f32 %v774_v49, %v238_v51 }
 0x154   :  { %v246_v54 = vadd.f32 %v775_v52, %v242_v53 }
 0x156   :  { %v247_v55 = vpack.c.bf16 %v246_v54, %v246_v54 }
 0x158   :  { %320 = vmatmul.bf16.vlgmr.msra.gmra.mxu1 %v247_v55 }
 0x1d5   :  { %v321_v56 = vpop.f32.mrf.mxu1 }
 0x1d6   :  { %v322_v57 = vadd.f32 %v321_v56, %v246_v54 }
 0x1d8   :  { %325 = vadd.xlane.f32.xlu1 %v322_v57  ;;  %v328_v59 = vmul.f32 %v322_v57, %v322_v57 }
 0x1dd   :  { %v323_v58 = vpop.f32.mrf.mxu1 }
 0x1e0   :  { %329 = vadd.xlane.f32.xlu1 %v328_v59 }
 0x24b   :  { %v326_v3 = vpop.xlane.xlu1 %325 }
 0x24c   :  { %v327_v5 = vmul.f32 0.03125, %v326_v3 }
 0x24e   :  { %v332_v7 = vmul.f32 %v327_v5, %v327_v5  ;;  %v334_v17 = vsub.f32 %v322_v57, %v327_v5 }
 0x253   :  { %v330_v6 = vpop.xlane.xlu1 %329 }
 0x254   :  { %v331_v8 = vmul.f32 0.03125, %v330_v6 }
 0x256   :  { %v333_v9 = vsub.f32 %v331_v8, %v332_v7 }
 0x258   :  { %v335_v10 = vadd.f32 1e-05, %v333_v9 }
 0x25a   :  { %780 = vrsqrt.f32 %v335_v10  ;;  %vm342_vm4 = vweird.f32 %v335_v10 }
 0x260   :  { %v781_v11 = vpop.eup %780 }
 0x261   :  { %v337_v12 = vmul.f32 %v781_v11, %v335_v10  ;;  %vm343_vm3 = vweird.f32 %v781_v11 }
 0x262   :  { %vm344_vm5 = vmor %vm342_vm4, %vm343_vm3 }
 0x263   :  { %v338_v13 = vmul.f32 %v781_v11, %v337_v12 }
 0x265   :  { %v339_v14 = vmul.f32 0.5, %v338_v13 }
 0x267   :  { %v340_v15 = vsub.f32 1.5, %v339_v14 }
 0x269   :  { %v341_v16 = vmul.f32 %v781_v11, %v340_v15 }
 0x26b   :  { %v345_v18 = vsel %vm344_vm5, %v781_v11, %v341_v16 }
 0x26c   :  { %v346_v19 = vmul.f32 %v345_v18, %v334_v17 }
 0x26e   :  { %v347_v20 = vmul.f32 %v774_v49, %v346_v19  ;;  %v776_v49 = vld [vmem:[%s1014_s5 + $0x1] ss:$0 sm:$0xff]  ;;  %s938_s5 = smov [#allocation13]  }
 0x270   :  { %v348_v21 = vadd.f32 %v775_v52, %v347_v20  ;;  %v777_v52 = vld [vmem:[%s1015_s6 + $0x1] ss:$0 sm:$0xff]  ;;  %s571_s6 = sshll.u32 %s938_s5, 4  ;;  %s572_s6 = int_to_ptr.vmem [resolvable:$true] %s571_s6 }
 0x272   :  { %v353_v22 = vpack.c.bf16 %v348_v21, %v348_v21 }
 0x274   :  { %427 = vmatmul.bf16.vlgmr.msra.gmra.mxu2 %v353_v22 }
 0x2f7   :  { %v428_v23 = vpop.f32.mrf.mxu2 }
 0x2f8   :  { %v429_v24 = vadd.f32 %v428_v23, %v348_v21 }
 0x2fa   :  { %432 = vadd.xlane.f32.xlu2 %v429_v24  ;;  %v435_v26 = vmul.f32 %v429_v24, %v429_v24 }
 0x2ff   :  { %v430_v25 = vpop.f32.mrf.mxu2 }
 0x302   :  { %436 = vadd.xlane.f32.xlu2 %v435_v26 }
 0x36d   :  { %v433_v34 = vpop.xlane.xlu2 %432 }
 0x36e   :  { %v434_v36 = vmul.f32 0.03125, %v433_v34 }
 0x370   :  { %v439_v38 = vmul.f32 %v434_v36, %v434_v36  ;;  %v441_v48 = vsub.f32 %v429_v24, %v434_v36 }
 0x375   :  { %v437_v37 = vpop.xlane.xlu2 %436 }
 0x376   :  { %v438_v39 = vmul.f32 0.03125, %v437_v37 }
 0x378   :  { %v440_v40 = vsub.f32 %v438_v39, %v439_v38 }
 0x37a   :  { %v442_v41 = vadd.f32 1e-05, %v440_v40 }
 0x37c   :  { %782 = vrsqrt.f32 %v442_v41  ;;  %vm449_vm7 = vweird.f32 %v442_v41 }
 0x382   :  { %v783_v42 = vpop.eup %782 }
 0x383   :  { %v444_v43 = vmul.f32 %v783_v42, %v442_v41  ;;  %vm450_vm6 = vweird.f32 %v783_v42 }
 0x384   :  { %vm451_vm8 = vmor %vm449_vm7, %vm450_vm6 }
 0x385   :  { %v445_v44 = vmul.f32 %v783_v42, %v444_v43 }
 0x387   :  { %v446_v45 = vmul.f32 0.5, %v445_v44 }
 0x389   :  { %v447_v46 = vsub.f32 1.5, %v446_v45 }
 0x38b   :  { %v448_v47 = vmul.f32 %v783_v42, %v447_v46 }
 0x38d   :  { %v452_v50 = vsel %vm451_vm8, %v783_v42, %v448_v47 }
 0x38e   :  { %v453_v51 = vmul.f32 %v452_v50, %v441_v48 }
 0x390   :  { %v457_v53 = vmul.f32 %v776_v49, %v453_v51 }
 0x392   :  { %v461_v54 = vadd.f32 %v777_v52, %v457_v53 }
 0x394   :  { %v462_v55 = vpack.c.bf16 %v461_v54, %v461_v54 }
 0x396   :  { %536 = vmatmul.bf16.vlgmr.msra.gmra.mxu3 %v462_v55 }
 0x419   :  { %v537_v56 = vpop.f32.mrf.mxu3 }
 0x41a   :  { %v538_v57 = vadd.f32 %v537_v56, %v461_v54 }
 0x41c   :  { %541 = vadd.xlane.f32.xlu0 %v538_v57  ;;  %v544_v58 = vmul.f32 %v538_v57, %v538_v57 }
 0x41e   :  { %545 = vadd.xlane.f32.xlu1 %v544_v58 }
 0x421   :  { %v539_v59 = vpop.f32.mrf.mxu3 }
 0x48f   :  { %v542_v60 = vpop.xlane.xlu0 %541 }
 0x490   :  { %v543_v61 = vmul.f32 0.03125, %v542_v60 }
 0x491   :  { %v546_v62 = vpop.xlane.xlu1 %545 }
 0x492   :  { %v548_v63 = vmul.f32 %v543_v61, %v543_v61  ;;  %v547_v0 = vmul.f32 0.03125, %v546_v62  ;;  %v550_v9 = vsub.f32 %v538_v57, %v543_v61 }
 0x494   :  { %v549_v1 = vsub.f32 %v547_v0, %v548_v63 }
 0x496   :  { %v551_v2 = vadd.f32 1e-05, %v549_v1 }
 0x498   :  { %784 = vrsqrt.f32 %v551_v2  ;;  %vm558_vm10 = vweird.f32 %v551_v2 }
 0x49e   :  { %v785_v3 = vpop.eup %784 }
 0x49f   :  { %v553_v4 = vmul.f32 %v785_v3, %v551_v2  ;;  %vm559_vm9 = vweird.f32 %v785_v3 }
 0x4a0   :  { %vm560_vm11 = vmor %vm558_vm10, %vm559_vm9 }
 0x4a1   :  { %v554_v5 = vmul.f32 %v785_v3, %v553_v4 }
 0x4a3   :  { %v555_v6 = vmul.f32 0.5, %v554_v5 }
 0x4a5   :  { %v556_v7 = vsub.f32 1.5, %v555_v6 }
 0x4a7   :  { %v557_v8 = vmul.f32 %v785_v3, %v556_v7 }
 0x4a9   :  { %v561_v10 = vsel %vm560_vm11, %v785_v3, %v557_v8 }
 0x4aa   :  { %v562_v11 = vmul.f32 %v561_v10, %v550_v9 }
 0x4ac   :  { %v563_v12 = vmul.f32 %v776_v49, %v562_v11 }
 0x4ae   :  { %v564_v13 = vadd.f32 %v777_v52, %v563_v12 }
 0x4b0   :  { %565 = vst [vmem:[#allocation13] sm:$0xff] %v564_v13 }
 0x4b1   :  { %576 = dma.vmem_to_hbm [thread:$0]  %s572_s6, 128, %s574_s24, [#allocation5]  }
 0x4b2   :  { %926 = dma.done.wait [#allocation5], 128  }
 0x4b3   :  { %927 = vsyncadd [#allocation5], 4294967168 }
 0x4b4   :  { %581 = vsyncpa [#allocation4], 1 }
 0x4b5   :  { %582 = vsyncpa [#allocation9], 1 }
 0x4b6   :  { %583 = vsyncpa [#allocation12], 1 }
 0x4b7   :  { %584 = vsyncpa [#allocation5], 1 }
 0x4b8   :  { %585 = vsyncpa [#allocation6], 1 }

</bundles_post_ra>
